<compile_context>
chip_gen: v7x
topology: tpu7x:2x2x1
jax: 0.10.0
libtpu: 0.0.40
codegen_flags: <defaults>
</compile_context>

<pallas_src>
import functools

import jax
import jax.numpy as jnp
from jax import lax
from jax.experimental import pallas as pl
from jax.experimental.pallas import tpu as pltpu


def _conv_gn_relu_kernel(p_ref, w_ref, b_ref, g_ref, beta_ref, avg_ref, o_ref,
                         *, batch_block, hw, eps, apply_relu):
    # p_ref:    (B, K, HWp)     im2col patches (HW zero-padded to HWp)
    # w_ref:    (Cout, K)       conv weight, reshaped
    # b_ref:    (Cout, 1)       conv bias
    # g_ref:    (Cout, 1)       GroupNorm gamma
    # beta_ref: (Cout, 1)       GroupNorm beta
    # avg_ref:  (Cout, Cout)    A[c,c'] = [grp(c)==grp(c')] / (HW*Cg)
    # o_ref:    (B, Cout, HWp)  fused output (lane-dense)
    w = w_ref[...]
    b = b_ref[...]
    gamma = g_ref[...]
    beta = beta_ref[...]
    avg = avg_ref[...]
    hw_f = float(hw)

    def body(s, carry):
        # --- Conv2d: one MXU matmul per sample, f32 accumulation ---
        p = p_ref[s]                                                  # (K, HWp)
        y = jnp.dot(w, p, preferred_element_type=jnp.float32)         # (Cout, HWp)

        # --- GroupNorm: one-pass stats, conv bias folded analytically ---
        # z = y + b; zero-padded HW columns have y == 0 so they add nothing.
        sum_y = jnp.sum(y, axis=1, keepdims=True)                     # (Cout, 1)
        sum_y2 = jnp.sum(y * y, axis=1, keepdims=True)                # (Cout, 1)
        s1 = sum_y + hw_f * b                                         # sum(z)
        s2 = sum_y2 + 2.0 * b * sum_y + hw_f * b * b                  # sum(z^2)
        stats = jnp.concatenate([s1, s2], axis=1)                     # (Cout, 2)
        # Single tiny MXU matmul -> per-channel copies of group E[z], E[z^2].
        gstats = jnp.dot(avg, stats, preferred_element_type=jnp.float32)
        mean = gstats[:, 0:1]
        var = gstats[:, 1:2] - mean * mean                            # biased var
        scale = gamma * lax.rsqrt(var + eps)                          # (Cout, 1)
        shift = (b - mean) * scale + beta                             # (Cout, 1)

        # --- Affine + ReLU: single fused full-tensor pass ---
        out = y * scale + shift                                       # (Cout, HWp)
        if apply_relu:
            out = jnp.maximum(out, 0.0)
        o_ref[s] = out.astype(o_ref.dtype)
        return carry

    lax.fori_loop(0, batch_block, body, None, unroll=True)


def _largest_divisor_at_most(n, cap):
    cap = max(1, min(cap, n))
    for d in range(cap, 0, -1):
        if n % d == 0:
            return d
    return 1


def conv2dgr_forward(x_nchw, weight, bias, gamma, beta, *,
                     stride=1, padding=0, num_groups=4, eps=1e-5,
                     activation=True, batch_block=None, conv_dtype=None):
    """Forward of conv2dgr. Inputs/outputs are PyTorch-style NCHW float32.

    conv_dtype: optionally cast the big-matmul operands (patches + weight) to
      e.g. jnp.bfloat16 (native MXU rate on v5e/v6e, halves patch DMA bytes);
      accumulation stays f32.  Default keeps f32 operands for accuracy.
    """
    n, c_in, h, w = x_nchw.shape
    c_out, _, kh, kw = weight.shape
    assert c_out % num_groups == 0, "num_groups must divide out_channels"
    cg = c_out // num_groups

    h_out = (h + 2 * padding - kh) // stride + 1
    w_out = (w + 2 * padding - kw) // stride + 1
    hw = h_out * w_out
    k_dim = c_in * kh * kw

    # --- im2col as ONE fused XLA op.  Feature dim is ordered (Cin, KH, KW),
    #     matching weight.reshape(Cout, Cin*KH*KW).  HIGHEST precision keeps
    #     the identity-filter gather exact (no bf16 truncation of inputs). ---
    # TODO(synk): for large images, build the KH*KW taps inside the kernel from
    # the padded (Cin, Hp, Wp) slab to remove the KH*KW-times patch HBM traffic.
    patches = lax.conv_general_dilated_patches(
        x_nchw, filter_shape=(kh, kw), window_strides=(stride, stride),
        padding=((padding, padding), (padding, padding)),
        dimension_numbers=("NCHW", "OIHW", "NCHW"),
        precision=lax.Precision.HIGHEST)                 # (N, K, Hout, Wout)
    patches = patches.reshape(n, k_dim, hw)

    # Lane-dense guard: pad HW up to a multiple of 128 so stores are full-lane
    # vst (not masked partial stores); zero columns do not perturb the stats.
    hw_p = max(128, ((hw + 127) // 128) * 128)
    if hw_p != hw:
        patches = jnp.pad(patches, ((0, 0), (0, 0), (0, hw_p - hw)))

    w2 = weight.reshape(c_out, k_dim)
    if conv_dtype is not None:
        patches = patches.astype(conv_dtype)
        w2 = w2.astype(conv_dtype)
    b2 = bias.reshape(c_out, 1).astype(jnp.float32)
    g2 = gamma.reshape(c_out, 1).astype(jnp.float32)
    be2 = beta.reshape(c_out, 1).astype(jnp.float32)

    # Block-diagonal group-averaging matrix (built once, stays VMEM-resident).
    grp = jnp.arange(c_out, dtype=jnp.int32) // cg
    avg = (grp[:, None] == grp[None, :]).astype(jnp.float32) / float(hw * cg)

    # --- Batch several samples per grid step (amortize ~0.35us step overhead,
    #     MXU fill/drain, and weight reuse) while keeping grid length >= 2 so
    #     both v7x TensorCores get work. ---
    if batch_block is None:
        bytes_per_sample = (k_dim + c_out) * hw_p * max(patches.dtype.itemsize, 4)
        target = max(1, (512 * 1024) // max(bytes_per_sample, 1))
        cap = target if n < 2 else max(1, min(target, n // 2))
        batch_block = _largest_divisor_at_most(n, cap)
    assert n % batch_block == 0
    grid_n = n // batch_block

    kernel = functools.partial(_conv_gn_relu_kernel,
                               batch_block=batch_block, hw=hw, eps=eps,
                               apply_relu=activation)

    # Advisory cost estimate: lets XLA schedule/overlap the surrounding im2col /
    # reshape ops with the custom call.
    flops = 2 * n * c_out * k_dim * hw_p + 6 * n * c_out * hw_p
    bytes_accessed = (patches.size * patches.dtype.itemsize
                      + w2.size * w2.dtype.itemsize
                      + 4 * (3 * c_out + c_out * c_out)
                      + 4 * n * c_out * hw_p)
    cost = pl.CostEstimate(flops=int(flops), transcendentals=int(n * c_out),
                           bytes_accessed=int(bytes_accessed))

    # Scoped VMEM: double-buffered in/out blocks + resident params + headroom,
    # clipped under v7x's 64 MiB physical VMEM.
    # TODO(synk): for very large images add an HW grid axis ("arbitrary") with
    # running GroupNorm sums in VMEM scratch instead of whole-image blocks.
    step_bytes = 4 * batch_block * (k_dim + c_out) * hw_p
    vmem_limit = int(min(max(4 * step_bytes + (2 << 20), 32 << 20), 60 << 20))

    out_flat = pl.pallas_call(
        kernel,
        out_shape=jax.ShapeDtypeStruct((n, c_out, hw_p), x_nchw.dtype),
        grid_spec=pltpu.PrefetchScalarGridSpec(
            num_scalar_prefetch=0,
            grid=(grid_n,),
            in_specs=[
                pl.BlockSpec((batch_block, k_dim, hw_p), lambda i: (i, 0, 0)),
                pl.BlockSpec((c_out, k_dim), lambda i: (0, 0)),
                pl.BlockSpec((c_out, 1), lambda i: (0, 0)),
                pl.BlockSpec((c_out, 1), lambda i: (0, 0)),
                pl.BlockSpec((c_out, 1), lambda i: (0, 0)),
                pl.BlockSpec((c_out, c_out), lambda i: (0, 0)),
            ],
            out_specs=pl.BlockSpec((batch_block, c_out, hw_p),
                                   lambda i: (i, 0, 0)),
        ),
        compiler_params=pltpu.CompilerParams(
            dimension_semantics=("parallel",),
            vmem_limit_bytes=vmem_limit),
        cost_estimate=cost,
    )(patches, w2, b2, g2, be2, avg)

    # (N, Cout, HWp) -> drop lane padding -> NCHW (contiguous reshape, no transpose).
    return out_flat[:, :, :hw].reshape(n, c_out, h_out, w_out)


def _reference(x, weight, bias, gamma, beta, *, stride, padding, num_groups,
               eps, activation):
    """Pure-JAX reference (Conv2d -> GroupNorm -> ReLU), PyTorch semantics."""
    n = x.shape[0]
    c_out = weight.shape[0]
    z = lax.conv_general_dilated(
        x, weight, (stride, stride), [(padding, padding), (padding, padding)],
        dimension_numbers=("NCHW", "OIHW", "NCHW"),
        precision=lax.Precision.HIGHEST) + bias.reshape(1, -1, 1, 1)
    h_out, w_out = z.shape[2], z.shape[3]
    zg = z.reshape(n, num_groups, -1)
    mean = zg.mean(axis=2, keepdims=True)
    var = zg.var(axis=2, keepdims=True)          # biased, like torch GroupNorm
    zn = (zg - mean) / jnp.sqrt(var + eps)
    zn = zn.reshape(n, c_out, h_out, w_out)
    out = zn * gamma.reshape(1, -1, 1, 1) + beta.reshape(1, -1, 1, 1)
    if activation:
        out = jnp.maximum(out, 0.0)
    return out


if __name__ == "__main__":
    # Module config: conv2dgr(in_channels=4, out_channels=8, kernel_size=3,
    #                         stride=1, padding=1, activation=True)
    N, C_IN, H, W = 2, 4, 16, 16
    C_OUT, K = 8, 3
    STRIDE, PAD = 1, 1
    # TODO(synk): hawtorch's custom GroupNorm default group count is not shown;
    # assuming num_groups=4 (divides out_channels) with eps=1e-5 and affine params.
    NUM_GROUPS = 4
    EPS = 1e-5

    key = jax.random.PRNGKey(0)
    kx, kw_, kb = jax.random.split(key, 3)

    x = jax.random.normal(kx, (N, C_IN, H, W), dtype=jnp.float32)
    # Deterministic Conv2d params (PyTorch OIHW weight layout), uniform(-b, b)
    # with b = 1/sqrt(fan_in) like nn.Conv2d's default init.
    fan_in = C_IN * K * K
    bound = 1.0 / (fan_in ** 0.5)
    weight = jax.random.uniform(kw_, (C_OUT, C_IN, K, K),
                                minval=-bound, maxval=bound, dtype=jnp.float32)
    bias = jax.random.uniform(kb, (C_OUT,),
                              minval=-bound, maxval=bound, dtype=jnp.float32)
    # GroupNorm affine params default init.
    gamma = jnp.ones((C_OUT,), dtype=jnp.float32)
    beta = jnp.zeros((C_OUT,), dtype=jnp.float32)

    out = conv2dgr_forward(x, weight, bias, gamma, beta,
                           stride=STRIDE, padding=PAD,
                           num_groups=NUM_GROUPS, eps=EPS, activation=True)
    jax.block_until_ready(out)
    assert out.shape == (N, C_OUT, H, W), out.shape

    ref = _reference(x, weight, bias, gamma, beta,
                     stride=STRIDE, padding=PAD, num_groups=NUM_GROUPS,
                     eps=EPS, activation=True)
    err = float(jnp.max(jnp.abs(out - ref)))
    assert err < 1e-2, f"max abs err vs reference: {err}"
    print("KERNEL_OK")
</pallas_src>

<mosaic_0001>
module attributes {stable_mosaic.version = 11 : i64} {
  func.func @_conv_gn_relu_kernel(%arg0: i32, %arg1: memref<1x36x256xf32, #tpu.memory_space<vmem>>, %arg2: memref<8x36xf32, #tpu.memory_space<vmem>>, %arg3: memref<8x1xf32, #tpu.memory_space<vmem>>, %arg4: memref<8x1xf32, #tpu.memory_space<vmem>>, %arg5: memref<8x1xf32, #tpu.memory_space<vmem>>, %arg6: memref<8x8xf32, #tpu.memory_space<vmem>>, %arg7: memref<1x8x256xf32, #tpu.memory_space<vmem>>) attributes {dimension_semantics = [#tpu.dimension_semantics<parallel>], iteration_bounds = array<i64: 2>, scalar_prefetch = 0 : i64, scratch_operands = 0 : i64, tpu.core_type = #tpu.core_type<tc>, window_params = [{transform_indices = @transform_0, window_bounds = array<i64: 1, 36, 256>}, {pipeline_mode = #tpu.pipeline_mode<synchronous>, transform_indices = @transform_1, window_bounds = array<i64: 8, 36>}, {pipeline_mode = #tpu.pipeline_mode<synchronous>, transform_indices = @transform_2, window_bounds = array<i64: 8, 1>}, {pipeline_mode = #tpu.pipeline_mode<synchronous>, transform_indices = @transform_3, window_bounds = array<i64: 8, 1>}, {pipeline_mode = #tpu.pipeline_mode<synchronous>, transform_indices = @transform_4, window_bounds = array<i64: 8, 1>}, {pipeline_mode = #tpu.pipeline_mode<synchronous>, transform_indices = @transform_5, window_bounds = array<i64: 8, 8>}, {transform_indices = @transform_6, window_bounds = array<i64: 1, 8, 256>}]} {
    %c0 = arith.constant 0 : index
    %c0_0 = arith.constant 0 : index
    %0 = vector.load %arg2[%c0, %c0_0] : memref<8x36xf32, #tpu.memory_space<vmem>>, vector<8x36xf32>
    %c0_1 = arith.constant 0 : index
    %c0_2 = arith.constant 0 : index
    %1 = vector.load %arg3[%c0_1, %c0_2] : memref<8x1xf32, #tpu.memory_space<vmem>>, vector<8x1xf32>
    %c0_3 = arith.constant 0 : index
    %c0_4 = arith.constant 0 : index
    %2 = vector.load %arg4[%c0_3, %c0_4] : memref<8x1xf32, #tpu.memory_space<vmem>>, vector<8x1xf32>
    %c0_5 = arith.constant 0 : index
    %c0_6 = arith.constant 0 : index
    %3 = vector.load %arg5[%c0_5, %c0_6] : memref<8x1xf32, #tpu.memory_space<vmem>>, vector<8x1xf32>
    %c0_7 = arith.constant 0 : index
    %c0_8 = arith.constant 0 : index
    %4 = vector.load %arg6[%c0_7, %c0_8] : memref<8x8xf32, #tpu.memory_space<vmem>>, vector<8x8xf32>
    %c0_i32 = arith.constant 0 : i32
    %5 = arith.index_cast %c0_i32 : i32 to index
    %c0_9 = arith.constant 0 : index
    %c0_10 = arith.constant 0 : index
    %6 = vector.load %arg1[%5, %c0_9, %c0_10] : memref<1x36x256xf32, #tpu.memory_space<vmem>>, vector<1x36x256xf32>
    %7 = vector.shape_cast %6 : vector<1x36x256xf32> to vector<36x256xf32>
    %cst = arith.constant dense<0.000000e+00> : vector<8x256xf32>
    %8 = tpu.matmul %0, %7, %cst {dimension_numbers = #tpu.dot_dimension_numbers<[1], [0], [0], [1], [0, 0, 1, 1], [], []>} : vector<8x36xf32>, vector<36x256xf32>, vector<8x256xf32> -> vector<8x256xf32>
    %cst_11 = arith.constant dense<0.000000e+00> : vector<8xf32>
    %9 = vector.multi_reduction <add>, %8, %cst_11 [1] : vector<8x256xf32> to vector<8xf32>
    %10 = vector.shape_cast %9 : vector<8xf32> to vector<8x1xf32>
    %11 = arith.mulf %8, %8 : vector<8x256xf32>
    %cst_12 = arith.constant dense<0.000000e+00> : vector<8xf32>
    %12 = vector.multi_reduction <add>, %11, %cst_12 [1] : vector<8x256xf32> to vector<8xf32>
    %13 = vector.shape_cast %12 : vector<8xf32> to vector<8x1xf32>
    %cst_13 = arith.constant 2.560000e+02 : f32
    %14 = vector.broadcast %cst_13 : f32 to vector<8x1xf32>
    %15 = arith.mulf %14, %1 : vector<8x1xf32>
    %16 = arith.addf %10, %15 : vector<8x1xf32>
    %cst_14 = arith.constant 2.000000e+00 : f32
    %17 = vector.broadcast %cst_14 : f32 to vector<8x1xf32>
    %18 = arith.mulf %17, %1 : vector<8x1xf32>
    %19 = arith.mulf %18, %10 : vector<8x1xf32>
    %20 = arith.addf %13, %19 : vector<8x1xf32>
    %cst_15 = arith.constant 2.560000e+02 : f32
    %21 = vector.broadcast %cst_15 : f32 to vector<8x1xf32>
    %22 = arith.mulf %21, %1 : vector<8x1xf32>
    %23 = arith.mulf %22, %1 : vector<8x1xf32>
    %24 = arith.addf %20, %23 : vector<8x1xf32>
    %25 = tpu.concatenate %16, %24 in 1 : vector<8x1xf32>, vector<8x1xf32> -> vector<8x2xf32>
    %cst_16 = arith.constant dense<0.000000e+00> : vector<8x2xf32>
    %26 = tpu.matmul %4, %25, %cst_16 {dimension_numbers = #tpu.dot_dimension_numbers<[1], [0], [0], [1], [0, 0, 1, 1], [], []>} : vector<8x8xf32>, vector<8x2xf32>, vector<8x2xf32> -> vector<8x2xf32>
    %27 = vector.extract_strided_slice %26 {offsets = [0, 0], sizes = [8, 1], strides = [1, 1]} : vector<8x2xf32> to vector<8x1xf32>
    %28 = vector.extract_strided_slice %26 {offsets = [0, 1], sizes = [8, 1], strides = [1, 1]} : vector<8x2xf32> to vector<8x1xf32>
    %29 = arith.mulf %27, %27 : vector<8x1xf32>
    %30 = arith.subf %28, %29 : vector<8x1xf32>
    %cst_17 = arith.constant 9.99999974E-6 : f32
    %31 = vector.broadcast %cst_17 : f32 to vector<8x1xf32>
    %32 = arith.addf %30, %31 : vector<8x1xf32>
    %33 = math.rsqrt %32 : vector<8x1xf32>
    %34 = arith.mulf %2, %33 : vector<8x1xf32>
    %35 = arith.subf %1, %27 : vector<8x1xf32>
    %36 = arith.mulf %35, %34 : vector<8x1xf32>
    %37 = arith.addf %36, %3 : vector<8x1xf32>
    %38 = vector.broadcast %34 : vector<8x1xf32> to vector<8x256xf32>
    %39 = arith.mulf %8, %38 : vector<8x256xf32>
    %40 = vector.broadcast %37 : vector<8x1xf32> to vector<8x256xf32>
    %41 = arith.addf %39, %40 : vector<8x256xf32>
    %cst_18 = arith.constant 0.000000e+00 : f32
    %42 = vector.broadcast %cst_18 : f32 to vector<8x256xf32>
    %43 = arith.maximumf %41, %42 : vector<8x256xf32>
    %44 = arith.index_cast %c0_i32 : i32 to index
    %c0_19 = arith.constant 0 : index
    %c0_20 = arith.constant 0 : index
    %45 = vector.load %arg7[%44, %c0_19, %c0_20] : memref<1x8x256xf32, #tpu.memory_space<vmem>>, vector<1x8x256xf32>
    %46 = vector.shape_cast %45 : vector<1x8x256xf32> to vector<8x256xf32>
    %47 = vector.shape_cast %43 : vector<8x256xf32> to vector<1x8x256xf32>
    tpu.vector_store %arg7[%44, %c0_19, %c0_20], %47 {strides = array<i32>} : memref<1x8x256xf32, #tpu.memory_space<vmem>>, vector<1x8x256xf32>,
    %c1_i32 = arith.constant 1 : i32
    return
  }
  func.func @transform_0(%arg0: i32) -> (i32, i32, i32) {
    %c0_i32 = arith.constant 0 : i32
    %c0_i32_0 = arith.constant 0 : i32
    %c0_i32_1 = arith.constant 0 : i32
    return %arg0, %c0_i32, %c0_i32_0 : i32, i32, i32
  }
  func.func @transform_1(%arg0: i32) -> (i32, i32) {
    %c0_i32 = arith.constant 0 : i32
    %c0_i32_0 = arith.constant 0 : i32
    %c0_i32_1 = arith.constant 0 : i32
    return %c0_i32, %c0_i32_0 : i32, i32
  }
  func.func @transform_2(%arg0: i32) -> (i32, i32) {
    %c0_i32 = arith.constant 0 : i32
    %c0_i32_0 = arith.constant 0 : i32
    %c0_i32_1 = arith.constant 0 : i32
    return %c0_i32, %c0_i32_0 : i32, i32
  }
  func.func @transform_3(%arg0: i32) -> (i32, i32) {
    %c0_i32 = arith.constant 0 : i32
    %c0_i32_0 = arith.constant 0 : i32
    %c0_i32_1 = arith.constant 0 : i32
    return %c0_i32, %c0_i32_0 : i32, i32
  }
  func.func @transform_4(%arg0: i32) -> (i32, i32) {
    %c0_i32 = arith.constant 0 : i32
    %c0_i32_0 = arith.constant 0 : i32
    %c0_i32_1 = arith.constant 0 : i32
    return %c0_i32, %c0_i32_0 : i32, i32
  }
  func.func @transform_5(%arg0: i32) -> (i32, i32) {
    %c0_i32 = arith.constant 0 : i32
    %c0_i32_0 = arith.constant 0 : i32
    %c0_i32_1 = arith.constant 0 : i32
    return %c0_i32, %c0_i32_0 : i32, i32
  }
  func.func @transform_6(%arg0: i32) -> (i32, i32, i32) {
    %c0_i32 = arith.constant 0 : i32
    %c0_i32_0 = arith.constant 0 : i32
    %c0_i32_1 = arith.constant 0 : i32
    return %arg0, %c0_i32, %c0_i32_0 : i32, i32, i32
  }
}

</mosaic_0001>

<bundles_post_ra>
// kernel: tpu_custom_call.1
= control target key start
LH: loop header
LB: loop body
LE: loop exit
PB: predicated region body
PF: predicated region fallthrough
CT: control target
= control target key end

     0   :  { %11 = vsyncpa [#allocation3], 0  ;;  %s850_s0 = inlined_call_operand.vmem [shape: f32[2,36,256], index: 0, kind: input, shape index: {}]   ;;  %s851_s1 = inlined_call_operand.vmem [shape: f32[8,36], index: 1, kind: input, shape index: {}]   ;;  %s852_s2 = inlined_call_operand.vmem [shape: f32[8,1], index: 2, kind: input, shape index: {}]   ;;  %s853_s3 = inlined_call_operand.vmem [shape: f32[8,1], index: 3, kind: input, shape index: {}]   ;;  %s854_s4 = inlined_call_operand.vmem [shape: f32[8,1], index: 4, kind: input, shape index: {}]   ;;  %s855_s5 = inlined_call_operand.vmem [shape: f32[8,8], index: 5, kind: input, shape index: {}]   ;;  %s856_s6 = inlined_call_operand.hbm [shape: f32[2,8,256], index: 6, kind: output, shape index: {}]  }
   0x1   :  { %13 = vsyncpa [#allocation3 + $0x1], 0  ;;  %s735_s21 = smov 0   ;;  %s737_s22 = smov 0  }
   0x2   :  { %s739_s23 = smov 0   ;;  %s741_s24 = smov 0  }
   0x3 LB: > { %s756_s25 = sadd.s32 4294967295, %s692_s24   ;;  %s550_s26 = sadd.s32 4294967294, %s692_s24   ;;  %s692_s24 = sphi %s741_s24, %s862_s24   ;;  %s688_s23 = sphi %s739_s23, %s861_s23   ;;  %s684_s22 = sphi %s737_s22, %s860_s22   ;;  %s680_s21 = sphi %s735_s21, %s859_s21  }
   0x4   : > { %s760_s27 = sadd.s32 1, %s692_s24   ;;  %s157_s28 = sadd.s32 1, %s688_s23 }
   0x5   : > { %s154_s29 = ssub.s32 %s692_s24, %s760_s27  ;;  %p167_p0 = scmp.ne.s32.totalorder %s688_s23, %s684_s22 }
   0x6   : > { %p155_p1 = scmp.eq.s32.totalorder %s154_s29, 0  ;;  %p168_p2 = scmp.eq.s32.totalorder %s756_s25, 1 }
   0x7   : > { %p173_p3 = scmp.ne.s32.totalorder %s684_s22, %s680_s21  ;;  %p174_p4 = scmp.eq.s32.totalorder %s550_s26, 1 }
   0x8   : > { %s771_s30 = scalar_select %p155_p1, %s688_s23, %s157_s28  }
   0x9   : > { %p773_p5 = por %p168_p2, %p167_p0  ;;  %p777_p6 = por %p174_p4, %p173_p3 }
   0xa   : > { %p553_p7 = scmp.ge.s32.totalorder %s692_s24, 1  ;;  %p215_p8 = scmp.lt.s32.totalorder %s692_s24, 3 }
   0xc   : > { %p216_p9 = pnand %p553_p7, %p215_p8 }
   0xd   : > { %p245_p10 = scmp.lt.s32.totalorder (!%p216_p9), %s756_s25, 1  ;;  %v694_v0 = vmov (!%p216_p9), 0.0   ;;  %vm269_vm0 = vcmask (!%p216_p9), 1043456   ;;  %v250_v15 = vld [vmem:[%s851_s1] sm:$0xff] (!%p216_p9)  ;;  %vm265_vm1 = vcmask (!%p216_p9), 293888   ;;  %vm695_vm2 = vmmov (!%p216_p9), 0  }
   0xe   : > { %219 = sbr.rel (%p216_p9) target bundleno = 1132 (0x46c), region = 44  ;;  %340 = vmatprep.mubr.f32.mxu0 (!%p216_p9), %v694_v0  ;;  %568 = vmatprep.subr.mxu1 (!%p216_p9), %v694_v0  ;;  %v251_v22 = vld [vmem:[%s852_s2] sm:$0xff] (!%p216_p9)  ;;  %s696_s18 = smov (!%p216_p9), 1   ;;  %vm366_vm3 = vcmask (!%p216_p9), 7168   ;;  %vm368_vm4 = vcmask (!%p216_p9), 64512   ;;  %v697_v41 = vmov (!%p216_p9), 0  }
   0xf   : > { %570 = vmatprep.mubr.msk.f32.mxu1 (!%p216_p9), %vm695_vm2, %v694_v0  ;;  %v357_v23 = vmul.f32 (!%p216_p9), 2.0, %v251_v22  ;;  %v355_v25 = vmul.f32 (!%p216_p9), 256.0, %v251_v22  ;;  %v254_v33 = vld [vmem:[%s855_s5] sm:$0xff] (!%p216_p9)  ;;  %626 = vset.pattern.permute.xlu1 (!%p216_p9), %v697_v41  ;;  %s698_s26 = smov (!%p216_p9), 127   ;;  %s242_s11 = sand.u32 (!%p216_p9), 1, %s684_s22  }
  0x10   : > { %627 = vset.pattern.permute.xlu0 (!%p216_p9), %v697_v41  ;;  %v252_v43 = vld [vmem:[%s853_s3] sm:$0xff] (!%p216_p9)  ;;  %s554_s12 = sshll.u32 (!%p216_p9), %s242_s11, 4  ;;  %s477_s19 = scalar_lea.sflag (!%p216_p9), [#allocation3], %s242_s11 }
  0x11   : > { %v360_v27 = vmul.f32 (!%p216_p9), %v355_v25, %v251_v22  ;;  %v253_v47 = vld [vmem:[%s854_s4] sm:$0xff] (!%p216_p9)  ;;  %s244_s14 = scalar_lea.vmem (!%p216_p9), [#allocation2], %s554_s12  ;;  %s699_s20 = smov (!%p216_p9), [#allocation2]  }
  0x12   : > { %s491_s15 = sshll.u32 (!%p216_p9), %s244_s14, 4  ;;  %s810_s15 = int_to_ptr.vmem [resolvable:$true] %s491_s15 }
  0x15   : > { %s246_s9 = scalar_select %p245_p10, %s756_s25, 1 }
  0x17   : > { %s581_s10 = smul.u32 80, %s246_s9 }
  0x19   : > { %s249_s13 = scalar_lea.vmem %s850_s0, %s581_s10 }
  0x1a   : > { %v256_v1 = vld [vmem:[%s249_s13 + $0x8] sm:$0xff]  ;;  %v258_v2 = vld [vmem:[%s249_s13 + $0x18] sm:$0xff]  ;;  %v255_v3 = vld [vmem:[%s249_s13] sm:$0xff] }
  0x1b   : > { %v573_v4 = vpack.c.bf16 %v258_v2, %v256_v1  ;;  %v257_v5 = vld [vmem:[%s249_s13 + $0x10] sm:$0xff]  ;;  %v260_v6 = vld [vmem:[%s249_s13 + $0x28] sm:$0xff]  ;;  %v262_v7 = vld [vmem:[%s249_s13 + $0x38] sm:$0xff] }
  0x1c   : > { %v575_v8 = vpack.c.bf16 %v257_v5, %v255_v3  ;;  %v577_v9 = vpack.c.bf16 %v262_v7, %v260_v6  ;;  %v259_v10 = vld [vmem:[%s249_s13 + $0x20] sm:$0xff]  ;;  %v261_v11 = vld [vmem:[%s249_s13 + $0x30] sm:$0xff]  ;;  %v264_v13 = vld [vmem:[%s249_s13 + $0x48] sm:$0xf] }
  0x1d   : > { %574 = vmatprep.subr.bf16.mxu0 %v573_v4  ;;  %v579_v12 = vpack.c.bf16 %v261_v11, %v259_v10  ;;  %v263_v14 = vld [vmem:[%s249_s13 + $0x40] sm:$0xf]  ;;  %s565_s13 = sshll.u32 %s756_s25, 8  ;;  %s630_s25 = scalar_lea.vmem %s810_s15, 256 }
  0x1e   : > { %576 = vmatpush1.bf16.msra.mxu0 %v575_v8  ;;  %p631_p11 = scmp.ne.s32.totalorder %s810_s15, %s630_s25 }
  0x1f   : > { %578 = vmatprep.subr.bf16.mxu0 %v577_v9 }
  0x20   : > { %p632_p12 = pnand %p631_p11, %p773_p5 }
  0x22   : > { %580 = vmatpush1.bf16.msra.mxu0 %v579_v12  ;;  %p633_p13 = pneg %p632_p12 }
  0x23   : > { %556 = vmatprep.subr.msk.mxu0 %vm269_vm0, %v264_v13 }
  0x26   : > { %557 = vmatpush1.msk.msra.mxu0 %vm269_vm0, %v263_v14 }
  0x27   : > { %558 = vmatmul.mubr.msk.f32.vlgmr.msra.gmra.mrb[0].mxu0 %vm265_vm1, %v250_v15 }
  0xfa   : > { %v342_v16 = vpop.f32.mrb[0].mxu0 }
  0xfb   : > { %v344_v17 = vpop.f32.mrb[1].mxu0  ;;  %v350_v18 = vmul.f32 %v342_v16, %v342_v16 }
  0xfc   : > { %v351_v19 = vmul.f32 %v344_v17, %v344_v17  ;;  %v347_v20 = vadd.f32 %v344_v17, %v342_v16 }
  0xfe   : > { %348 = vadd.xlane.f32.xlu0 %v347_v20  ;;  %v352_v21 = vadd.f32 %v351_v19, %v350_v18 }
 0x102   : > { %353 = vadd.xlane.f32.xlu0 %v352_v21 }
 0x18b   : > { %v349_v24 = vpop.xlane.xlu0 %348 }
 0x18c   : > { %v358_v26 = vmul.f32 %v357_v23, %v349_v24  ;;  %v356_v31 = vadd.f32 %v355_v25, %v349_v24 }
 0x18f   : > { %v354_v28 = vpop.xlane.xlu0 %353 }
 0x190   : > { %v359_v29 = vadd.f32 %v358_v26, %v354_v28 }
 0x192   : > { %v361_v30 = vadd.f32 %v360_v27, %v359_v29 }
 0x194   : > { %363 = vrot.lane.b32.xlu1 %v361_v30, %s696_s18 }
 0x206   : > { %v364_v32 = vpop.permute.xlu1 %363 }
 0x207   : > { %v367_v34 = vsel %vm366_vm3, %v356_v31, %v364_v32 }
 0x208   : > { %569 = vmatpush3.msra.mxu1 %v367_v34 }
 0x209   : > { %571 = vmatmul.mubr.msk.f32.vlgmr.msra.gmra.mrb[0].mxu1 %vm368_vm4, %v254_v33 }
 0x2dc   : > { %v438_v35 = vpop.f32.mrb[0].mxu1 }
 0x2dd   : > { %v442_v36 = vmul.f32 %v438_v35, %v438_v35  ;;  %v572_v37 = vpop.f32.mrb[1].mxu1  ;;  %v455_v45 = vsub.f32 %v251_v22, %v438_v35 }
 0x2df   : > { %444 = vrot.lane.b32.xlu1 %v442_v36, %s696_s18  ;;  %s808_s18 = scalar_lea.hbm %s856_s6, %s565_s13 }
 0x351   : > { %v445_v38 = vpop.permute.xlu1 %444 }
 0x352   : > { %v447_v39 = vsub.f32 %v438_v35, %v445_v38 }
 0x354   : > { %v448_v40 = vadd.f32 1e-05, %v447_v39 }
 0x356   : > { %628 = vrsqrt.f32 %v448_v40 }
 0x360   : > { %v629_v42 = vpop.eup %628 }
 0x361   : > { %451 = vrot.lane.b32.xlu0 %v629_v42, %s698_s26  ;;  %s634_s26 = sshll.u32 %s699_s20, 4  ;;  %s635_s26 = int_to_ptr.vmem [resolvable:$false] %s634_s26 }
 0x362   : > { %s636_s28 = scalar_lea.vmem %s635_s26, 512  ;;  %p637_p0 = scmp.lt.s32.totalorder %s810_s15, %s635_s26 }
 0x363   : > { %p638_p1 = scmp.lt.s32.totalorder %s636_s28, %s630_s25 }
 0x365   : > { %p639_p2 = por %p638_p1, %p637_p0 }
 0x367   : > { %p640_p3 = pnand %p639_p2, %p633_p13 }
 0x3d3   : > { %v452_v44 = vpop.permute.xlu0 %451 }
 0x3d4   : > { %v454_v46 = vmul.f32 %v452_v44, %v252_v43 }
 0x3d6   : > { %v456_v48 = vmul.f32 %v455_v45, %v454_v46  ;;  %460 = vperm.xlu1 %626, %v454_v46  }
 0x3d8   : > { %v457_v49 = vadd.f32 %v456_v48, %v253_v47 }
 0x3da   : > { %467 = vperm.xlu1 %626, %v457_v49  }
 0x455   : > { %v461_v50 = vpop.permute.xlu1 %460 }
 0x456   : > { %v463_v51 = vmul.f32 %v461_v50, %v342_v16  ;;  %v464_v52 = vmul.f32 %v461_v50, %v344_v17 }
 0x459   : > { %v468_v53 = vpop.permute.xlu1 %467 }
 0x45a   : > { %v470_v54 = vadd.f32 %v468_v53, %v463_v51  ;;  %v471_v55 = vadd.f32 %v468_v53, %v464_v52 }
 0x45c   : > { %v472_v56 = vmax.f32 %v470_v54, 0.0  ;;  %v473_v57 = vmax.f32 %v471_v55, 0.0 }
 0x45e   : > { %474 = vst [vmem:[%s244_s14] sm:$0xff] %v472_v56  ;;  %475 = vst [vmem:[%s244_s14 + $0x8] sm:$0xff] %v473_v57 }
 0x45f   : > { %643 = shalt.err (!%p640_p3)
}
 0x460   : > { %s644_s29 = scalar_lea.hbm %s808_s18, 256  ;;  %s648_s11 = scalar_lea.hbm %s856_s6, 512 }
 0x461   : > { %p645_p4 = scmp.ne.s32.totalorder %s808_s18, %s644_s29  ;;  %p649_p9 = scmp.lt.u32.totalorder %s808_s18, %s856_s6 }
 0x462   : > { %p650_p10 = scmp.lt.u32.totalorder %s648_s11, %s644_s29  ;;  %p652_p12 = scmp.lt.u32.totalorder %s644_s29, %s808_s18 }
 0x463   : > { %p646_p7 = pnand %p645_p4, %p773_p5 }
 0x464   : > { %p651_p11 = por %p650_p10, %p649_p9 }
 0x465   : > { %p647_p8 = pneg %p646_p7 }
 0x466   : > { %p653_p13 = por %p652_p12, %p651_p11 }
 0x468   : > { %p654_p0 = pnand %p653_p13, %p647_p8 }
 0x46a   : > { %657 = shalt.err (!%p654_p0)
}
 0x46b   : > { %582 = dma.vmem_to_hbm [thread:$0]  (%p773_p5), %s810_s15, 256, %s808_s18, %s477_s19  }
 0x46c PF: > { %p588_p1 = scmp.ge.s32.totalorder %s692_s24, 2  ;;  %s503_s14 = sand.u32 1, %s680_s21  }
 0x46d   : > { %s504_s16 = scalar_lea.sflag [#allocation3], %s503_s14 }
 0x46e   : > { %p585_p2 = pnand %p588_p1, %p777_p6 }
 0x470   : > { %675 = dma.done.wait (!%p585_p2), %s504_s16, 256  }
 0x471   : > { %677 = vsyncadd (!%p585_p2), %s504_s16, 4294967040  ;;  %p16_p3 = scmp.ge.s32.totalorder %s760_s27, 4   ;;  %s859_s21 = smov %s684_s22 }
 0x472   : > { %s860_s22 = smov %s688_s23  ;;  %s861_s23 = smov %s771_s30 }
 0x473   : > { %s862_s24 = smov %s760_s27  ;;  %18 = sbr.rel (!%p16_p3) target bundleno = 3 (0x3), region = 79 }
 0x47a   :  { %509 = vsyncpa [#allocation3], 1 }
 0x47b   :  { %511 = vsyncpa [#allocation3 + $0x1], 1 }

</bundles_post_ra>
